<compile_context>
chip_gen: v7x
topology: tpu7x:2x2x1
jax: 0.10.0
libtpu: 0.0.40
codegen_flags: <defaults>
</compile_context>

<pallas_src>
import functools

import jax
import jax.numpy as jnp
from jax import lax
from jax.experimental import pallas as pl
from jax.experimental.pallas import tpu as pltpu

LANES = 128
TARGET_TILE_BYTES = 4 << 20   # 4 MiB per input per grid step (DMA tile)
CHUNK_ROWS = 1024             # in-kernel fold granularity (bounds VMEM temps)


def _sublane_pack(dtype):
    """Sublane packing factor for the second-minor dim of a VMEM tile."""
    itemsize = jnp.dtype(dtype).itemsize
    return {4: 8, 2: 16, 1: 32}.get(itemsize, 8)


def _num_splits():
    """2-way grid split only on 2-TensorCore chips (v7x); 1 elsewhere."""
    try:
        kind = jax.devices()[0].device_kind.lower()
    except Exception:
        kind = ""
    return 2 if ("v7" in kind or "7x" in kind) else 1


def _pick_tiles(rows, sub, itemsize, max_tile_rows=None):
    """Pick (tile_rows, chunk_rows): tile_rows % chunk_rows == 0, both
    multiples of the dtype sublane pack, chunk_rows % 8 == 0."""
    def rup(a, m):
        return -(-a // m) * m

    if max_tile_rows is None:
        max_tile_rows = TARGET_TILE_BYTES // (LANES * itemsize)
    max_tile_rows = max(rup(max_tile_rows, sub), sub)

    # Chunk: <= CHUNK_ROWS, <= max tile, no bigger than the (rounded) data.
    chunk_rows = min(rup(CHUNK_ROWS, sub), max_tile_rows, rup(rows, sub))
    # Make the max tile a multiple of the chunk, then size the tile.
    max_tile_rows = max((max_tile_rows // chunk_rows) * chunk_rows, chunk_rows)
    tile_rows = min(rup(rows, chunk_rows), max_tile_rows)
    return tile_rows, chunk_rows


def _sumsq_kernel(x_ref, t_ref, o_ref, *, rows, tile_rows, chunk_rows,
                  num_blocks, blocks_per_split, needs_mask):
    """Accumulates a per-split (8,128) partial sum of squared diffs."""
    i = pl.program_id(1)          # sequential reduction axis
    num_chunks = tile_rows // chunk_rows

    @pl.when(i == 0)
    def _():
        o_ref[...] = jnp.zeros_like(o_ref)

    def chunk_fold(c_idx, masked, block_base):
        r0 = pl.multiple_of(c_idx * chunk_rows, chunk_rows)
        xd = x_ref[pl.ds(r0, chunk_rows), :]
        td = t_ref[pl.ds(r0, chunk_rows), :]
        # Native-dtype subtract (bf16 at half width on v6e/v7x); square and
        # accumulate in f32.
        d = (xd - td).astype(jnp.float32)
        sq = d * d
        if masked:
            # Lane-dense row ids; rows past the real array contribute zero.
            row_ids = (block_base + r0
                       + lax.broadcasted_iota(jnp.int32, (chunk_rows, LANES), 0))
            sq = jnp.where(row_ids < rows, sq, 0.0)
        # Fold (chunk_rows,128) -> (8,128) with sublane-wise VPU adds; no
        # cross-lane XLU work on the hot path.
        return jnp.sum(sq.reshape(chunk_rows // 8, 8, LANES), axis=0)

    def run(masked, block_base):
        def body(c_idx, acc):
            return acc + chunk_fold(c_idx, masked, block_base)
        acc = lax.fori_loop(0, num_chunks, body,
                            jnp.zeros((8, LANES), jnp.float32))
        o_ref[...] += acc[None]

    if not needs_mask:
        run(False, 0)
    else:
        c = pl.program_id(0)
        logical_block = c * blocks_per_split + i
        is_edge = logical_block >= num_blocks - 1
        # Unclamped base: overshoot (clamped re-read) blocks mask to all-zero.
        block_base = logical_block * tile_rows

        @pl.when(jnp.logical_not(is_edge))
        def _():
            run(False, 0)

        @pl.when(is_edge)
        def _():
            run(True, block_base)


def huber_loss(x, target, delta, *, _max_tile_rows=None):
    """Pallas implementation of HuberLoss.forward. Returns a scalar f32."""
    assert x.shape == target.shape
    xf = jnp.ravel(x)
    tf = jnp.ravel(target)
    n = xf.shape[0]

    if n == 0 or n % LANES != 0:
        # Non-128-aligned flatten size: a (rows,128) view would force XLA to
        # materialize a full copy of both tensors before the kernel streams
        # them again (~3x HBM traffic), so a plain fused reduction wins here.
        # TODO(synk): manual-DMA (pl.ANY) path for ragged sizes.
        d = xf.astype(jnp.float32) - tf.astype(jnp.float32)
        sumsq = jnp.sum(d * d)
    else:
        rows = n // LANES
        x2d = xf.reshape(rows, LANES)      # zero-copy view
        t2d = tf.reshape(rows, LANES)

        itemsize = jnp.dtype(x2d.dtype).itemsize
        sub = _sublane_pack(x2d.dtype)
        tile_rows, chunk_rows = _pick_tiles(rows, sub, itemsize, _max_tile_rows)

        num_blocks = pl.cdiv(rows, tile_rows)
        num_splits = min(_num_splits(), num_blocks)
        blocks_per_split = pl.cdiv(num_blocks, num_splits)
        needs_mask = (num_splits * blocks_per_split * tile_rows) != rows

        def in_map(c, i):
            # Clamp so an overshooting grid step re-reads the last valid
            # block (its contribution is masked to zero in-kernel).
            return (jnp.minimum(c * blocks_per_split + i, num_blocks - 1), 0)

        kernel = functools.partial(
            _sumsq_kernel, rows=rows, tile_rows=tile_rows,
            chunk_rows=chunk_rows, num_blocks=num_blocks,
            blocks_per_split=blocks_per_split, needs_mask=needs_mask)

        in_tile_bytes = tile_rows * LANES * itemsize
        # 2 inputs x 2 pipeline buffers + chunk-sized f32 compute temps + slack.
        vmem_limit = 4 * in_tile_bytes + 6 * chunk_rows * LANES * 4 + (2 << 20)
        vmem_limit = int(min(max(vmem_limit, 16 << 20), 48 << 20))

        partials = pl.pallas_call(
            kernel,
            out_shape=jax.ShapeDtypeStruct((num_splits, 8, LANES), jnp.float32),
            grid=(num_splits, blocks_per_split),
            in_specs=[
                pl.BlockSpec((tile_rows, LANES), in_map),
                pl.BlockSpec((tile_rows, LANES), in_map),
            ],
            out_specs=pl.BlockSpec((1, 8, LANES), lambda c, i: (c, 0, 0)),
            compiler_params=pltpu.CompilerParams(
                dimension_semantics=("parallel", "arbitrary"),
                vmem_limit_bytes=vmem_limit,
            ),
            cost_estimate=pl.CostEstimate(
                flops=3 * n,
                transcendentals=0,
                bytes_accessed=2 * n * itemsize + num_splits * 8 * LANES * 4,
            ),
        )(x2d, t2d)

        sumsq = jnp.sum(partials)

    # Scalar Huber epilogue (matches the PyTorch module exactly). Comparing
    # err (not sumsq) against delta keeps the semantics for any delta value.
    delta = jnp.asarray(delta, jnp.float32)
    err = jnp.sqrt(sumsq)
    small = 0.5 * sumsq
    large = 0.5 * delta * delta + delta * (err - delta)
    return jnp.where(err < delta, small, large)


def huber_loss_ref(x, target, delta):
    err = jnp.sqrt(jnp.sum(
        (x.astype(jnp.float32) - target.astype(jnp.float32)) ** 2))
    return jnp.where(
        err < delta,
        0.5 * err * err,
        0.5 * delta * delta + delta * (err - delta),
    )


if __name__ == "__main__":
    key = jax.random.PRNGKey(0)
    k1, k2, k3, k4 = jax.random.split(key, 4)
    delta = 1.0  # HUBER_DELTA

    # Small shapes consistent with the module (pointwise loss over a tensor).
    x = jax.random.normal(k1, (2, 4, 16, 16), dtype=jnp.float32)
    target = jax.random.normal(k2, (2, 4, 16, 16), dtype=jnp.float32)
    out = jax.block_until_ready(huber_loss(x, target, delta))
    ref = huber_loss_ref(x, target, delta)
    assert jnp.allclose(out, ref, rtol=1e-5, atol=1e-5), (out, ref)

    # Exercise the multi-block / partial-last-block mask path by forcing a
    # tiny tile (rows=20 with 8-row blocks -> last block is ragged).
    x2 = jax.random.normal(k3, (2, 4, 20, 16), dtype=jnp.float32)
    t2 = jax.random.normal(k4, (2, 4, 20, 16), dtype=jnp.float32)
    out2 = jax.block_until_ready(huber_loss(x2, t2, delta, _max_tile_rows=8))
    ref2 = huber_loss_ref(x2, t2, delta)
    assert jnp.allclose(out2, ref2, rtol=1e-5, atol=1e-5), (out2, ref2)

    print("KERNEL_OK")
</pallas_src>

<mosaic_0001>
module attributes {stable_mosaic.version = 11 : i64} {
  func.func @_sumsq_kernel(%arg0: i32, %arg1: i32, %arg2: memref<16x128xf32, #tpu.memory_space<vmem>>, %arg3: memref<16x128xf32, #tpu.memory_space<vmem>>, %arg4: memref<1x8x128xf32, #tpu.memory_space<vmem>>) attributes {dimension_semantics = [#tpu.dimension_semantics<parallel>, #tpu.dimension_semantics<arbitrary>], iteration_bounds = array<i64: 1, 1>, scalar_prefetch = 0 : i64, scratch_operands = 0 : i64, tpu.core_type = #tpu.core_type<tc>, window_params = [{transform_indices = @transform_0, window_bounds = array<i64: 16, 128>}, {transform_indices = @transform_1, window_bounds = array<i64: 16, 128>}, {transform_indices = @transform_2, window_bounds = array<i64: 1, 8, 128>}]} {
    %c0_i32 = arith.constant 0 : i32
    %0 = arith.cmpi eq, %arg1, %c0_i32 : i32
    %1 = arith.extui %0 : i1 to i32
    %c0_i32_0 = arith.constant 0 : i32
    %2 = arith.cmpi ne, %1, %c0_i32_0 : i32
    scf.if %2 {
      %cst_10 = arith.constant 0.000000e+00 : f32
      %19 = vector.broadcast %cst_10 : f32 to vector<1x8x128xf32>
      %c0_11 = arith.constant 0 : index
      %c0_12 = arith.constant 0 : index
      %c0_13 = arith.constant 0 : index
      %20 = vector.load %arg4[%c0_11, %c0_12, %c0_13] : memref<1x8x128xf32, #tpu.memory_space<vmem>>, vector<1x8x128xf32>
      tpu.vector_store %arg4[%c0_11, %c0_12, %c0_13], %19 {strides = array<i32>} : memref<1x8x128xf32, #tpu.memory_space<vmem>>, vector<1x8x128xf32>,
    } else {
    }
    %cst = arith.constant 0.000000e+00 : f32
    %3 = vector.broadcast %cst : f32 to vector<8x128xf32>
    %c0_i32_1 = arith.constant 0 : i32
    %c16_i32 = arith.constant 16 : i32
    %4 = arith.muli %c0_i32_1, %c16_i32 : i32
    %5 = tpu.assume_multiple %4, 16 : i32
    %6 = arith.index_cast %5 : i32 to index
    %c0 = arith.constant 0 : index
    %7 = vector.load %arg2[%6, %c0] : memref<16x128xf32, #tpu.memory_space<vmem>>, vector<16x128xf32>
    %8 = arith.index_cast %5 : i32 to index
    %c0_2 = arith.constant 0 : index
    %9 = vector.load %arg3[%8, %c0_2] : memref<16x128xf32, #tpu.memory_space<vmem>>, vector<16x128xf32>
    %10 = arith.subf %7, %9 : vector<16x128xf32>
    %11 = arith.mulf %10, %10 : vector<16x128xf32>
    %12 = vector.shape_cast %11 : vector<16x128xf32> to vector<2x8x128xf32>
    %cst_3 = arith.constant dense<0.000000e+00> : vector<8x128xf32>
    %13 = vector.multi_reduction <add>, %12, %cst_3 [0] : vector<2x8x128xf32> to vector<8x128xf32>
    %14 = arith.addf %3, %13 : vector<8x128xf32>
    %c1_i32 = arith.constant 1 : i32
    %c0_4 = arith.constant 0 : index
    %c0_5 = arith.constant 0 : index
    %c0_6 = arith.constant 0 : index
    %15 = vector.load %arg4[%c0_4, %c0_5, %c0_6] : memref<1x8x128xf32, #tpu.memory_space<vmem>>, vector<1x8x128xf32>
    %16 = vector.shape_cast %14 : vector<8x128xf32> to vector<1x8x128xf32>
    %17 = arith.addf %15, %16 : vector<1x8x128xf32>
    %c0_7 = arith.constant 0 : index
    %c0_8 = arith.constant 0 : index
    %c0_9 = arith.constant 0 : index
    %18 = vector.load %arg4[%c0_7, %c0_8, %c0_9] : memref<1x8x128xf32, #tpu.memory_space<vmem>>, vector<1x8x128xf32>
    tpu.vector_store %arg4[%c0_7, %c0_8, %c0_9], %17 {strides = array<i32>} : memref<1x8x128xf32, #tpu.memory_space<vmem>>, vector<1x8x128xf32>,
    return
  }
  func.func @transform_0(%arg0: i32, %arg1: i32) -> (i32, i32) {
    %c1_i32 = arith.constant 1 : i32
    %0 = arith.muli %arg0, %c1_i32 : i32
    %1 = arith.addi %0, %arg1 : i32
    %c0_i32 = arith.constant 0 : i32
    %2 = arith.minsi %1, %c0_i32 : i32
    %c0_i32_0 = arith.constant 0 : i32
    %c0_i32_1 = arith.constant 0 : i32
    return %2, %c0_i32_0 : i32, i32
  }
  func.func @transform_1(%arg0: i32, %arg1: i32) -> (i32, i32) {
    %c1_i32 = arith.constant 1 : i32
    %0 = arith.muli %arg0, %c1_i32 : i32
    %1 = arith.addi %0, %arg1 : i32
    %c0_i32 = arith.constant 0 : i32
    %2 = arith.minsi %1, %c0_i32 : i32
    %c0_i32_0 = arith.constant 0 : i32
    %c0_i32_1 = arith.constant 0 : i32
    return %2, %c0_i32_0 : i32, i32
  }
  func.func @transform_2(%arg0: i32, %arg1: i32) -> (i32, i32, i32) {
    %c0_i32 = arith.constant 0 : i32
    %c0_i32_0 = arith.constant 0 : i32
    %c0_i32_1 = arith.constant 0 : i32
    return %arg0, %c0_i32, %c0_i32_0 : i32, i32, i32
  }
}

</mosaic_0001>

<bundles_post_ra>
// kernel: tpu_custom_call.1
= control target key start
LH: loop header
LB: loop body
LE: loop exit
PB: predicated region body
PF: predicated region fallthrough
CT: control target
= control target key end

     0   :  { %7 = vsyncpa [#allocation3], 0  ;;  %s232_s0 = inlined_call_operand.hbm [shape: f32[16,128], index: 0, kind: input, shape index: {}]   ;;  %s233_s1 = inlined_call_operand.hbm [shape: f32[16,128], index: 1, kind: input, shape index: {}]   ;;  %s234_s2 = inlined_call_operand.hbm [shape: f32[1,8,128], index: 2, kind: output, shape index: {}]  }
   0x1   :  { %8 = vsyncpa [#allocation6], 0 }
   0x2   :  { %9 = vsyncpa [#allocation4], 0  ;;  %s176_s9 = smov [#allocation2]   ;;  %s104_s13 = scalar_lea.hbm %s232_s0, 256 }
   0x3   :  { %s21_s10 = sshll.u32 %s176_s9, 4  ;;  %p105_p0 = scmp.ne.s32.totalorder %s232_s0, %s104_s13  ;;  %s22_s10 = int_to_ptr.vmem [resolvable:$true] %s21_s10 }
   0x4   :  { %p108_p1 = scmp.lt.u32.totalorder %s104_s13, %s232_s0 }
   0x6   :  { %p110_p2 = pnand %p108_p1, %p105_p0 }
   0x8   :  { %113 = shalt.err (!%p110_p2)
}
   0x9   :  { %s114_s18 = scalar_lea.vmem %s22_s10, 256  ;;  %p119_p4 = scmp.lt.s32.totalorder %s22_s10, %s22_s10 }
   0xa   :  { %p115_p3 = scmp.ne.s32.totalorder %s22_s10, %s114_s18  ;;  %p120_p5 = scmp.lt.s32.totalorder %s114_s18, %s114_s18 }
   0xc   :  { %p121_p6 = por %p120_p5, %p119_p4 }
   0xe   :  { %p122_p7 = pnand %p121_p6, %p115_p3 }
  0x10   :  { %125 = shalt.err (!%p122_p7)
}
  0x11   :  { %s177_s19 = smov 128   ;;  %s178_s20 = smov 8  }
  0x12   :  { %27 = dma.hbm_to_vmem [thread:$0]  %s232_s0, 256, %s22_s10, [#allocation3], %s177_s19, %s177_s19, %s178_s20  }
  0x13   :  { %s179_s23 = smov [#allocation5]   ;;  %s126_s27 = scalar_lea.hbm %s233_s1, 256 }
  0x14   :  { %s39_s24 = sshll.u32 %s179_s23, 4  ;;  %p127_p8 = scmp.ne.s32.totalorder %s233_s1, %s126_s27  ;;  %s40_s24 = int_to_ptr.vmem [resolvable:$true] %s39_s24 }
  0x15   :  { %p130_p9 = scmp.lt.u32.totalorder %s126_s27, %s233_s1 }
  0x17   :  { %p132_p10 = pnand %p130_p9, %p127_p8 }
  0x19   :  { %135 = shalt.err (!%p132_p10)
}
  0x1a   :  { %s136_s4 = scalar_lea.vmem %s40_s24, 256  ;;  %p141_p12 = scmp.lt.s32.totalorder %s40_s24, %s40_s24 }
  0x1b   :  { %p137_p11 = scmp.ne.s32.totalorder %s40_s24, %s136_s4  ;;  %p142_p13 = scmp.lt.s32.totalorder %s136_s4, %s136_s4 }
  0x1d   :  { %p143_p0 = por %p142_p13, %p141_p12 }
  0x1f   :  { %p144_p1 = pnand %p143_p0, %p137_p11 }
  0x21   :  { %147 = shalt.err (!%p144_p1)
}
  0x22   :  { %45 = dma.hbm_to_vmem [thread:$0]  %s233_s1, 256, %s40_s24, [#allocation6], %s177_s19, %s177_s19, %s178_s20  }
  0x23   :  { %170 = dma.done.wait [#allocation3], 256  }
  0x24   :  { %171 = vsyncadd [#allocation3], 4294967040 }
  0x25   :  { %172 = dma.done.wait [#allocation6], 256  }
  0x26   :  { %173 = vsyncadd [#allocation6], 4294967040  ;;  %v65_v0 = vld [vmem:[#allocation2] sm:$0xff]  ;;  %v66_v1 = vld [vmem:[#allocation2 + $0x8] sm:$0xff]  ;;  %s180_s6 = smov [#allocation7]  }
  0x27   :  { %v67_v2 = vld [vmem:[#allocation5] sm:$0xff]  ;;  %v68_v3 = vld [vmem:[#allocation5 + $0x8] sm:$0xff]  ;;  %s84_s7 = sshll.u32 %s180_s6, 4  ;;  %s85_s7 = int_to_ptr.vmem [resolvable:$true] %s84_s7 }
  0x28   :  { %v69_v4 = vsub.f32 %v65_v0, %v67_v2  ;;  %v70_v5 = vsub.f32 %v66_v1, %v68_v3  ;;  %s148_s8 = scalar_lea.vmem %s85_s7, 128  ;;  %p153_p3 = scmp.lt.s32.totalorder %s85_s7, %s85_s7 }
  0x29   :  { %p149_p2 = scmp.ne.s32.totalorder %s85_s7, %s148_s8  ;;  %p154_p4 = scmp.lt.s32.totalorder %s148_s8, %s148_s8 }
  0x2a   :  { %v71_v6 = vmul.f32 %v69_v4, %v69_v4  ;;  %v72_v7 = vmul.f32 %v70_v5, %v70_v5 }
  0x2b   :  { %p155_p5 = por %p154_p4, %p153_p3 }
  0x2c   :  { %v73_v8 = vadd.f32 %v72_v7, %v71_v6 }
  0x2d   :  { %p156_p6 = pnand %p155_p5, %p149_p2 }
  0x2e   :  { %77 = vst [vmem:[#allocation7] sm:$0xff] %v73_v8 }
  0x2f   :  { %159 = shalt.err (!%p156_p6)
}
  0x30   :  { %s160_s10 = scalar_lea.hbm %s234_s2, 128 }
  0x31   :  { %p161_p7 = scmp.ne.s32.totalorder %s234_s2, %s160_s10  ;;  %p164_p8 = scmp.lt.u32.totalorder %s160_s10, %s234_s2 }
  0x33   :  { %p166_p9 = pnand %p164_p8, %p161_p7 }
  0x35   :  { %169 = shalt.err (!%p166_p9)
}
  0x36   :  { %87 = dma.vmem_to_hbm [thread:$0]  %s85_s7, 128, %s234_s2, [#allocation4]  }
  0x37   :  { %174 = dma.done.wait [#allocation4], 128  }
  0x38   :  { %175 = vsyncadd [#allocation4], 4294967168 }
  0x39   :  { %91 = vsyncpa [#allocation3], 1 }
  0x3a   :  { %92 = vsyncpa [#allocation6], 1 }
  0x3b   :  { %93 = vsyncpa [#allocation4], 1 }

</bundles_post_ra>
